<compile_context>
chip_gen: v5e
topology: v5e:2x2
jax: 0.10.0
libtpu: 0.0.40
codegen_flags: <defaults>
</compile_context>

<pallas_src>
import jax
import jax.numpy as jnp
from jax.experimental import pallas as pl
from jax.experimental.pallas import tpu as pltpu


def _round_up(a, b):
    return ((a + b - 1) // b) * b


def _make_backproject_kernel(M, tk, stream_dtype, mask_k_tail):
    """out[b, n] += sum_k x[b, k] * A[k, n]  (== A^T applied to x, batched)."""

    def kernel(x_ref, a_ref, o_ref):
        # x_ref: (B, tk)  streamed f32 block of (zero-padded) projections
        # a_ref: (tk, tn) streamed bf16 tile of the system matrix
        # o_ref: (B, tn)  f32 output block, VMEM-resident across the k axis
        k = pl.program_id(1)

        @pl.when(k == 0)
        def _():
            o_ref[...] = jnp.zeros_like(o_ref)

        a = a_ref[...]
        if mask_k_tail:
            # Last K block extends past M: zero stale rows so possible NaN/Inf
            # in uninitialized VMEM never reaches valid output columns.
            # (tk, 1) mask -> cheap lane-broadcast select, hidden under the DMA.
            row = jax.lax.broadcasted_iota(jnp.int32, (a.shape[0], 1), 0) + k * tk
            a = jnp.where(row < M, a, jnp.zeros_like(a))

        x = x_ref[...].astype(stream_dtype)
        o_ref[...] += jnp.dot(x, a, preferred_element_type=jnp.float32)

    return kernel


def backward_layer(x, system_matrix, *, tn=2048, tk=1024,
                   stream_dtype=jnp.bfloat16):
    """Pallas implementation of Backward_Layer.forward: batched A^T back-projection.

    x:             (B, M) float32 projections
    system_matrix: (M, N) system matrix A (streamed as `stream_dtype`)
    returns:       (B, N) float32 back-projected images
    """
    B, M = x.shape
    M2, N = system_matrix.shape
    assert M == M2, "x and system_matrix disagree on projection-bin count"

    # Clamp tiles to the problem; keep lane/sublane alignment (x128).
    # Note (v7x): if N is small relative to tn, prefer a smaller tn so the
    # parallel j axis has >= 2 blocks to split across the two TensorCores.
    tk = max(128, _round_up(min(tk, _round_up(M, 128)), 128))
    tn = max(128, _round_up(min(tn, _round_up(N, 128)), 128))

    grid_k = pl.cdiv(M, tk)
    grid_j = pl.cdiv(N, tn)

    # Zero-pad x along M only (cheap); padded bins contribute exactly zero.
    Mp = grid_k * tk
    x_p = x if Mp == M else jnp.pad(x, ((0, 0), (0, Mp - M)))

    # Stream A in a narrow dtype; no full-matrix padding copy.
    a_s = system_matrix if system_matrix.dtype == stream_dtype \
        else system_matrix.astype(stream_dtype)
    a_item = jnp.dtype(stream_dtype).itemsize

    kernel = _make_backproject_kernel(M, tk, stream_dtype, mask_k_tail=(M % tk != 0))

    # A tiles are double-buffered by the pipeline: budget VMEM explicitly.
    needed = 2 * (tk * tn * a_item + B * tk * 4 + B * tn * 4) + (2 << 20)
    vmem_limit = int(max(needed, 16 << 20))

    cost = pl.CostEstimate(
        flops=2 * B * M * N,
        transcendentals=0,
        bytes_accessed=M * N * a_item + B * Mp * 4 + B * N * 4,
    )

    out = pl.pallas_call(
        kernel,
        out_shape=jax.ShapeDtypeStruct((B, N), jnp.float32),
        grid_spec=pltpu.PrefetchScalarGridSpec(
            num_scalar_prefetch=0,
            grid=(grid_j, grid_k),  # (output-voxel tiles, reduction over bins)
            in_specs=[
                # x: streamed (B, tk) blocks -- no O(B*M) VMEM residency.
                pl.BlockSpec((B, tk), lambda j, k: (0, k)),
                # A: streamed (tk, tn) bf16 tiles, double-buffered.
                pl.BlockSpec((tk, tn), lambda j, k: (k, j)),
            ],
            # Output block index constant across k -> VMEM-resident accumulator.
            out_specs=pl.BlockSpec((B, tn), lambda j, k: (0, j)),
        ),
        compiler_params=pltpu.CompilerParams(
            dimension_semantics=("parallel", "arbitrary"),  # k must stay sequential
            vmem_limit_bytes=vmem_limit,
        ),
        cost_estimate=cost,
    )(x_p, a_s)

    return out


def _reference(x, a, stream_dtype=jnp.bfloat16):
    # Reference with the same operand quantization (f32 accumulate).
    return jnp.dot(x.astype(stream_dtype), a.astype(stream_dtype),
                   preferred_element_type=jnp.float32)


if __name__ == "__main__":
    key = jax.random.PRNGKey(0)
    k1, k2, k3, k4, k5, k6 = jax.random.split(key, 6)

    # --- Test 1: tile-divisible shapes, multi-step reduction + parallel axis ---
    B, M, N = 8, 384, 256
    x = jax.random.uniform(k1, (B, M), dtype=jnp.float32)
    A = jax.random.uniform(k2, (M, N), dtype=jnp.float32) * 0.01
    out = jax.block_until_ready(backward_layer(x, A, tn=128, tk=128))
    assert out.shape == (B, N)
    assert jnp.allclose(out, _reference(x, A), rtol=5e-3, atol=1e-4), "mismatch (test 1)"

    # --- Test 2: SPECT-like non-multiple shapes, default tiles (partial blocks) ---
    B2, M2, N2 = 4, 200, 300
    x2 = jax.random.uniform(k3, (B2, M2), dtype=jnp.float32)
    A2 = jax.random.uniform(k4, (M2, N2), dtype=jnp.float32) * 0.01
    out2 = jax.block_until_ready(backward_layer(x2, A2))
    assert out2.shape == (B2, N2)
    assert jnp.allclose(out2, _reference(x2, A2), rtol=5e-3, atol=1e-4), "mismatch (test 2)"

    # --- Test 3: non-multiple shapes with multiple K/N tiles (mask + edge blocks) ---
    B3, M3, N3 = 2, 333, 270
    x3 = jax.random.uniform(k5, (B3, M3), dtype=jnp.float32)
    A3 = jax.random.uniform(k6, (M3, N3), dtype=jnp.float32) * 0.01
    out3 = jax.block_until_ready(backward_layer(x3, A3, tn=128, tk=128))
    assert out3.shape == (B3, N3)
    assert jnp.allclose(out3, _reference(x3, A3), rtol=5e-3, atol=1e-4), "mismatch (test 3)"

    print("KERNEL_OK")
</pallas_src>

<mosaic_0001>
module attributes {stable_mosaic.version = 11 : i64} {
  func.func @kernel(%arg0: i32, %arg1: i32, %arg2: memref<8x128xf32, #tpu.memory_space<vmem>>, %arg3: memref<128x128xbf16, #tpu.memory_space<vmem>>, %arg4: memref<8x128xf32, #tpu.memory_space<vmem>>) attributes {dimension_semantics = [#tpu.dimension_semantics<parallel>, #tpu.dimension_semantics<arbitrary>], iteration_bounds = array<i64: 2, 3>, scalar_prefetch = 0 : i64, scratch_operands = 0 : i64, tpu.core_type = #tpu.core_type<tc>, window_params = [{transform_indices = @transform_0, window_bounds = array<i64: 8, 128>}, {transform_indices = @transform_1, window_bounds = array<i64: 128, 128>}, {transform_indices = @transform_2, window_bounds = array<i64: 8, 128>}]} {
    %c0_i32 = arith.constant 0 : i32
    %0 = arith.cmpi eq, %arg1, %c0_i32 : i32
    %1 = arith.extui %0 : i1 to i32
    %c0_i32_0 = arith.constant 0 : i32
    %2 = arith.cmpi ne, %1, %c0_i32_0 : i32
    scf.if %2 {
      %cst_8 = arith.constant 0.000000e+00 : f32
      %10 = vector.broadcast %cst_8 : f32 to vector<8x128xf32>
      %c0_9 = arith.constant 0 : index
      %c0_10 = arith.constant 0 : index
      %11 = vector.load %arg4[%c0_9, %c0_10] : memref<8x128xf32, #tpu.memory_space<vmem>>, vector<8x128xf32>
      tpu.vector_store %arg4[%c0_9, %c0_10], %10 {strides = array<i32>} : memref<8x128xf32, #tpu.memory_space<vmem>>, vector<8x128xf32>,
    } else {
    }
    %c0 = arith.constant 0 : index
    %c0_1 = arith.constant 0 : index
    %3 = vector.load %arg3[%c0, %c0_1] : memref<128x128xbf16, #tpu.memory_space<vmem>>, vector<128x128xbf16>
    %c0_2 = arith.constant 0 : index
    %c0_3 = arith.constant 0 : index
    %4 = vector.load %arg2[%c0_2, %c0_3] : memref<8x128xf32, #tpu.memory_space<vmem>>, vector<8x128xf32>
    %5 = arith.truncf %4 : vector<8x128xf32> to vector<8x128xbf16>
    %c0_4 = arith.constant 0 : index
    %c0_5 = arith.constant 0 : index
    %6 = vector.load %arg4[%c0_4, %c0_5] : memref<8x128xf32, #tpu.memory_space<vmem>>, vector<8x128xf32>
    %cst = arith.constant dense<0.000000e+00> : vector<8x128xf32>
    %7 = tpu.matmul %5, %3, %cst {dimension_numbers = #tpu.dot_dimension_numbers<[1], [0], [0], [1], [0, 0, 1, 1], [], []>} : vector<8x128xbf16>, vector<128x128xbf16>, vector<8x128xf32> -> vector<8x128xf32>
    %8 = arith.addf %6, %7 : vector<8x128xf32>
    %c0_6 = arith.constant 0 : index
    %c0_7 = arith.constant 0 : index
    %9 = vector.load %arg4[%c0_6, %c0_7] : memref<8x128xf32, #tpu.memory_space<vmem>>, vector<8x128xf32>
    tpu.vector_store %arg4[%c0_6, %c0_7], %8 {strides = array<i32>} : memref<8x128xf32, #tpu.memory_space<vmem>>, vector<8x128xf32>,
    return
  }
  func.func @transform_0(%arg0: i32, %arg1: i32) -> (i32, i32) {
    %c0_i32 = arith.constant 0 : i32
    %c0_i32_0 = arith.constant 0 : i32
    return %c0_i32, %arg1 : i32, i32
  }
  func.func @transform_1(%arg0: i32, %arg1: i32) -> (i32, i32) {
    %c0_i32 = arith.constant 0 : i32
    return %arg1, %arg0 : i32, i32
  }
  func.func @transform_2(%arg0: i32, %arg1: i32) -> (i32, i32) {
    %c0_i32 = arith.constant 0 : i32
    %c0_i32_0 = arith.constant 0 : i32
    return %c0_i32, %arg0 : i32, i32
  }
}

</mosaic_0001>

<bundles_post_ra>
// kernel: tpu_custom_call.1
= control target key start
LH: loop header
LB: loop body
LE: loop exit
PB: predicated region body
PF: predicated region fallthrough
CT: control target
= control target key end

     0   :  { %s1129_s0 = inlined_call_operand.hbm [shape: f32[8,384], index: 0, kind: input, shape index: {}]   ;;  %s1130_s1 = inlined_call_operand.hbm [shape: bf16[384,256], index: 1, kind: input, shape index: {}]   ;;  %s1131_s2 = inlined_call_operand.hbm [shape: f32[8,256], index: 2, kind: output, shape index: {}]  }
   0x1   :  { %1138 = sst [smem:[#allocation20_spill]] %s1129_s0 }
   0x2   :  { %7 = vsyncpa [#allocation3], 0 }
   0x3   :  { %9 = vsyncpa [#allocation3 + $0x1], 0 }
   0x4   :  { %10 = vsyncpa [#allocation6], 0 }
   0x5   :  { %12 = vsyncpa [#allocation6 + $0x1], 0 }
   0x6   :  { %13 = vsyncpa [#allocation4], 0 }
   0x7   :  { %15 = vsyncpa [#allocation4 + $0x1], 0  ;;  %s855_s9 = smov 0   ;;  %s857_s10 = smov 0  }
   0x8   :  { %s859_s11 = smov 0   ;;  %s861_s12 = smov 0  }
   0x9   :  { %s863_s13 = smov 0   ;;  %s865_s14 = smov 0  }
   0xa   :  { %s867_s15 = smov 0   ;;  %s869_s16 = smov 0  }
   0xb   :  { %s871_s17 = smov 0   ;;  %s873_s18 = smov 0  }
   0xc   :  { %s875_s19 = smov 0   ;;  %s877_s20 = smov 0  }
   0xd   :  { %s879_s21 = smov 0   ;;  %s881_s22 = smov 0  }
   0xe LB: > { %1139 = sst [smem:[#allocation11_spill]] %s790_s11  ;;  %s429_s23 = sadd.s32 4294967295, %s834_s22   ;;  %s834_s22 = sphi %s881_s22, %s21_s22   ;;  %s830_s21 = sphi %s879_s21, %s1176_s21   ;;  %s826_s20 = sphi %s877_s20, %s1166_s20   ;;  %s822_s19 = sphi %s875_s19, %s1175_s19   ;;  %s818_s18 = sphi %s873_s18, %s1165_s18   ;;  %s814_s17 = sphi %s871_s17, %s1164_s17   ;;  %s810_s16 = sphi %s869_s16, %s1174_s16   ;;  %s806_s15 = sphi %s867_s15, %s1173_s15   ;;  %s802_s14 = sphi %s865_s14, %s1172_s14   ;;  %s798_s13 = sphi %s863_s13, %s1171_s13   ;;  %s794_s12 = sphi %s861_s12, %s1170_s12   ;;  %s790_s11 = sphi %s859_s11, %s1161_s11   ;;  %s786_s10 = sphi %s857_s10, %s1169_s10   ;;  %s782_s9 = sphi %s855_s9, %s1168_s9  }
   0xf   : > { %1140 = sst [smem:[#allocation12_spill]] %s814_s17  ;;  %s430_s24 = sadd.s32 4294967294, %s834_s22  }
  0x10   : > { %1141 = sst [smem:[#allocation13_spill]] %s826_s20  ;;  %s30_s25 = sadd.s32 1, %s826_s20 }
  0x11   : > { %s33_s26 = sadd.s32 1, %s830_s21  ;;  %p31_p0 = scmp.ge.s32.totalorder %s30_s25, 3 }
  0x12   : > { %s40_s27 = sadd.s32 1, %s814_s17  ;;  %p47_p1 = scmp.ne.s32.totalorder %s814_s17, %s810_s16 }
  0x13   : > { %p48_p2 = scmp.eq.s32.totalorder %s834_s22, 0  ;;  %s1178_s25 = smov (%p31_p0, %s30_s25), 0 }
  0x14   : > { %1142 = sst [smem:[#allocation14_spill]] %s1178_s25  ;;  %s1180_s26 = smov (!%p31_p0, %s33_s26), %s830_s21 }
  0x15   : > { %s37_s28 = ssub.s32 %s826_s20, %s1178_s25  ;;  %p938_p3 = por %p48_p2, %p47_p1 }
  0x16   : > { %p35_p4 = scmp.ge.s32.totalorder %s1180_s26, 2  ;;  %p38_p5 = scmp.eq.s32.totalorder %s37_s28, 0 }
  0x17   : > { %p53_p6 = scmp.ne.s32.totalorder %s810_s16, %s806_s15  ;;  %p945_p7 = scmp.eq.s32.totalorder %s429_s23, 0 }
  0x18   : > { %s1182_s26 = smov (%p35_p4, %s1180_s26), 0  ;;  %s68_s7 = sadd.s32 1, %s802_s14 }
  0x19   : > { %1145 = sst [smem:[#allocation15_spill]] %s1182_s26  ;;  %p956_p8 = por %p945_p7, %p53_p6 }
  0x1a   : > { %s952_s3 = scalar_select %p38_p5, %s814_s17, %s40_s27  }
  0x1b   : > { %s64_s5 = ssub.s32 %s830_s21, %s1182_s26  ;;  %p75_p10 = scmp.ne.s32.totalorder %s802_s14, %s798_s13 }
  0x1c   : > { %1146 = sst [smem:[#allocation16_spill]] %s952_s3  ;;  %s65_s6 = sor.u32 %s64_s5, %s37_s28 }
  0x1d   : > { %p66_p9 = scmp.eq.s32.totalorder %s65_s6, 0  ;;  %p81_p11 = scmp.ne.s32.totalorder %s798_s13, %s794_s12 }
  0x1e   : > { %p92_p12 = scmp.eq.s32.totalorder %s64_s5, 0  ;;  %p972_p13 = por %p75_p10, %p48_p2 }
  0x1f   : > { %s968_s8 = scalar_select %p66_p9, %s802_s14, %s68_s7  }
  0x20   : > { %p978_p0 = por %p81_p11, %p945_p7  ;;  %s94_s28 = sadd.s32 1, %s790_s11 }
  0x21   : > { %1148 = sst [smem:[#allocation17_spill]] %s968_s8  ;;  %p104_p1 = scmp.ne.s32.totalorder %s790_s11, %s786_s10 }
  0x22   : > { %s986_s6 = scalar_select %p92_p12, %s790_s11, %s94_s28  }
  0x23   : > { %p105_p4 = scmp.eq.s32.totalorder %s429_s23, 5  ;;  %p110_p5 = scmp.ne.s32.totalorder %s786_s10, %s782_s9 }
  0x24   : > { %1151 = sst [smem:[#allocation18_spill]] %s986_s6  ;;  %p111_p2 = scmp.eq.s32.totalorder %s430_s24, 5 }
  0x25   : > { %p994_p6 = por %p105_p4, %p104_p1  ;;  %p506_p7 = scmp.lt.s32.totalorder %s834_s22, 6 }
  0x26   : > { %p999_p9 = por %p111_p2, %p110_p5  ;;  %s131_s5 = sand.u32 1, %s814_s17  }
  0x27   : > { %s433_s23 = sshll.u32 %s131_s5, 3  ;;  %s434_s7 = sshll.u32 %s826_s20, 3 }
  0x28   : > { %s1153_s30 = scalar_select %p999_p9, 1, 0 }
  0x29   : > { %s1155_s0 = sld [smem:[#allocation20_spill]]  ;;  %s135_s25 = scalar_lea.vmem [#allocation2], %s433_s23 }
  0x2a   : > { %1154 = sst [smem:[#allocation19_spill]] %s1153_s30  ;;  %s143_s3 = sshll.u32 %s135_s25, 4  ;;  %s144_s3 = int_to_ptr.vmem [resolvable:$true] %s143_s3 }
  0x2b   : > { %p496_p10 = pnand %p506_p7, %p938_p3  ;;  %s480_s6 = sshll.u32 %s826_s20, 5 }
  0x2c   : > { %p1017_p11 = pnand %p506_p7, %p972_p13  ;;  %p439_p12 = scmp.ge.s32.totalorder %s834_s22, 1 }
  0x2d   : > { %s132_s11 = scalar_lea.sflag [#allocation3], %s131_s5  ;;  %p172_p1 = scmp.lt.s32.totalorder %s834_s22, 7 }
  0x2e   : > { %s150_s26 = sand.u32 1, %s802_s14   ;;  %s159_s25 = sadd.s32 %s830_s21, %s480_s6 }
  0x2f   : > { %s139_s24 = scalar_lea.hbm %s1155_s0, %s434_s7  ;;  %p1025_p4 = pnand %p439_p12, %p172_p1 }
  0x30   : > { %s141_s8 = sshll.u32 %s139_s24, 4  ;;  %s435_s29 = sshll.u32 %s150_s26, 6  ;;  %s142_s8 = int_to_ptr.hbm [resolvable:$true] %s141_s8 }
  0x31   : > { %498 = dma.hbm_to_vmem [thread:$0]  (!%p496_p10), %s142_s8, 128, %s144_s3, %s132_s11  }
  0x32   : > { %s438_s7 = sshll.u32 %s159_s25, 2  ;;  %s154_s20 = scalar_lea.vmem [#allocation5], %s435_s29 }
  0x33   : > { %s161_s24 = scalar_lea.hbm %s1130_s1, %s438_s7  ;;  %s164_s30 = sshll.u32 %s154_s20, 4  ;;  %s165_s30 = int_to_ptr.vmem [resolvable:$true] %s164_s30 }
  0x34   : > { %s162_s0 = sshll.u32 %s161_s24, 4  ;;  %s151_s11 = scalar_lea.sflag [#allocation6], %s150_s26  ;;  %s163_s0 = int_to_ptr.hbm [resolvable:$true] %s162_s0 }
  0x35   : > { %s836_s3 = smov 128   ;;  %s837_s8 = smov 64  }
  0x36   : > { %s838_s5 = smov 4   ;;  %176 = sbr.rel (%p1025_p4) target bundleno = 239 (0xef), region = 28 }
  0x37   : > { %501 = dma.hbm_to_vmem [thread:$0]  (!%p1017_p11), %s163_s0, 1024, %s165_s30, %s151_s11, %s836_s3, %s837_s8, %s838_s5  }
  0x38   : > { %s178_s6 = sand.u32 (!%p1025_p4), 1, %s810_s16  }
  0x39   : > { %s1037_s25 = sshll.u32 (!%p1025_p4), %s178_s6, 3  ;;  %s179_s7 = scalar_lea.sflag (!%p1025_p4), [#allocation3], %s178_s6 }
  0x3a   : > { %s182_s29 = scalar_lea.vmem (!%p1025_p4), [#allocation2], %s1037_s25 }
  0x3b   : > { %769 = dma.done.wait (%p956_p8), %s179_s7, 128  }
  0x3c   : > { %771 = vsyncadd (%p956_p8), %s179_s7, 4294967168  ;;  %s188_s17 = sand.u32 1, %s798_s13  }
  0x3d   : > { %s441_s0 = sshll.u32 %s188_s17, 6  ;;  %s189_s20 = scalar_lea.sflag [#allocation6], %s188_s17 }
  0x3e   : > { %s192_s30 = scalar_lea.vmem [#allocation5], %s441_s0 }
  0x3f   : > { %773 = dma.done.wait (%p978_p0), %s189_s20, 1024  }
  0x40   : > { %775 = vsyncadd (%p978_p0), %s189_s20, 4294966272  ;;  %s216_s26 = sand.u32 1, %s786_s10   ;;  %p443_p3 = scmp.ne.s32.totalorder %s818_s18, 0 }
  0x41   : > { %s442_s23 = sshll.u32 %s216_s26, 3 }
  0x42   : > { %s1052_s28 = scalar_lea.vmem [#allocation7], %s442_s23  ;;  %223 = sbr.rel (%p443_p3) target bundleno = 73 (0x49), region = 40 }
  0x47   : > { %v839_v0 = vmov 0.0  }
  0x48   : > { %224 = vst [vmem:[%s1052_s28] sm:$0xff] %v839_v0 }
  0x49 PF: > { %v488_v1 = vld [vmem:[%s192_s30 + $0x38] sm:$0xff]  ;;  %v487_v2 = vld [vmem:[%s192_s30 + $0x30] sm:$0xff]  ;;  %v486_v3 = vld [vmem:[%s192_s30 + $0x28] sm:$0xff]  ;;  %s477_s18 = sshll.u32 %s822_s19, 3  ;;  %s320_s24 = sshll.u32 %s1052_s28, 4  ;;  %s321_s24 = int_to_ptr.vmem [resolvable:$true] %s320_s24 }
  0x4a   : > { %292 = vmatpush.bf16.msra.mxu0 %v488_v1  ;;  %v485_v4 = vld [vmem:[%s192_s30 + $0x20] sm:$0xff]  ;;  %v484_v5 = vld [vmem:[%s192_s30 + $0x18] sm:$0xff]  ;;  %v483_v6 = vld [vmem:[%s192_s30 + $0x10] sm:$0xff]  ;;  %s318_s15 = scalar_lea.hbm %s1131_s2, %s477_s18  ;;  %s308_s3 = scalar_lea.sflag [#allocation4], %s216_s26 }
  0x4b   : > { %v482_v7 = vld [vmem:[%s192_s30 + $0x8] sm:$0xff]  ;;  %v481_v8 = vld [vmem:[%s192_s30] sm:$0xff]  ;;  %v241_v9 = vld [vmem:[%s182_s29] sm:$0xff]  ;;  %s322_s11 = sshll.u32 %s318_s15, 4  ;;  %s704_s25 = scalar_lea.hbm %s1131_s2, 16  ;;  %s323_s11 = int_to_ptr.hbm [resolvable:$true] %s322_s11 }
  0x4c   : > { %v242_v10 = vpack.c.bf16 %v241_v9, %v241_v9  ;;  %s698_s8 = sshra.s32 %s323_s11, 4  ;;  %s699_s8 = int_to_ptr.hbm [resolvable:$true] %s698_s8 }
  0x4d   : > { %s700_s5 = scalar_lea.hbm %s699_s8, 8  ;;  %p705_p5 = scmp.lt.s32.totalorder %s699_s8, %s1131_s2 }
  0x4e   : > { %293 = vmatpush.bf16.msra.mxu0 %v487_v2  ;;  %p701_p8 = scmp.ne.s32.totalorder %s699_s8, %s700_s5  ;;  %p706_p2 = scmp.lt.s32.totalorder %s704_s25, %s700_s5 }
  0x4f   : > { %v243_v11 = vld [vmem:[%s1052_s28] sm:$0xff] }
  0x50   : > { %p702_p13 = pnand %p701_p8, %p994_p6  ;;  %p707_p7 = por %p706_p2, %p705_p5 }
  0x52   : > { %294 = vmatpush.bf16.msra.mxu0 %v486_v3  ;;  %p703_p0 = pneg %p702_p13 }
  0x54   : > { %p708_p10 = pnand %p707_p7, %p703_p0 }
  0x56   : > { %295 = vmatpush.bf16.msra.mxu0 %v485_v4 }
  0x5a   : > { %296 = vmatpush.bf16.msra.mxu0 %v484_v5 }
  0x5e   : > { %297 = vmatpush.bf16.msra.mxu0 %v483_v6 }
  0x62   : > { %298 = vmatpush.bf16.msra.mxu0 %v482_v7 }
  0x66   : > { %299 = vmatpush.bf16.msra.mxu0 %v481_v8 }
  0x69   : > { %300 = vmatmul.bf16.vlgmr.msra.gmra.mxu0 %v242_v10 }
  0xe6   : > { %v301_v12 = vpop.f32.mrf.mxu0 }
  0xe7   : > { %v305_v13 = vadd.f32 %v301_v12, %v243_v11 }
  0xe9   : > { %306 = vst [vmem:[%s1052_s28] sm:$0xff] %v305_v13 }
  0xea   : > { %711 = shalt.err (!%p708_p10)
}
  0xeb   : > { %493 = dma.vmem_to_hbm [thread:$0]  (%p994_p6), %s321_s24, 128, %s323_s11, %s308_s3  }
  0xee   : > { %v303_v14 = vpop.f32.mrf.mxu0 }
  0xef PF: > { %p507_p11 = scmp.ge.s32.totalorder %s834_s22, 2  ;;  %s334_s0 = sand.u32 1, %s782_s9  }
  0xf0   : > { %s335_s20 = scalar_lea.sflag [#allocation4], %s334_s0 }
  0xf1   : > { %p503_p12 = pnand %p507_p11, %p999_p9 }
  0xf3   : > { %p504_p1 = pneg %p503_p12 }
  0xf5   : > { %777 = dma.done.wait (%p504_p1), %s335_s20, 128  }
  0xf6   : > { %779 = vsyncadd (%p504_p1), %s335_s20, 4294967168  ;;  %s21_s22 = sadd.s32 1, %s834_s22   ;;  %s1160_s12 = sld [smem:[#allocation11_spill]] }
  0xf7   : > { %p1082_p4 = scmp.ge.s32.totalorder %s21_s22, 8   ;;  %s1161_s11 = sld [smem:[#allocation18_spill]] }
  0xf8   : > { %s1162_s26 = sld [smem:[#allocation17_spill]]  ;;  %s1168_s9 = smov %s786_s10 }
  0xf9   : > { %s1163_s23 = sld [smem:[#allocation12_spill]]  ;;  %s1173_s15 = smov %s810_s16 }
  0xfa   : > { %s1164_s17 = sld [smem:[#allocation16_spill]]  ;;  %s1175_s19 = smov %s830_s21 }
  0xfb   : > { %s1165_s18 = sld [smem:[#allocation13_spill]] }
  0xfc   : > { %s1166_s20 = sld [smem:[#allocation14_spill]]  ;;  %s1169_s10 = smov %s1160_s12 }
  0xfd   : > { %s1167_s28 = sld [smem:[#allocation15_spill]]  ;;  %s1170_s12 = smov %s798_s13 }
  0xfe   : > { %s1171_s13 = smov %s802_s14  ;;  %s1172_s14 = smov %s1162_s26 }
  0xff   : > { %s1174_s16 = smov %s1163_s23  ;;  %20 = sbr.rel (!%p1082_p4) target bundleno = 14 (0xe), region = 90 }
 0x103   : > { %s1176_s21 = smov %s1167_s28 }
 0x104   :  { %341 = vsyncpa [#allocation3], 1 }
 0x105   :  { %343 = vsyncpa [#allocation3 + $0x1], 1 }
 0x106   :  { %344 = vsyncpa [#allocation6], 1 }
 0x107   :  { %346 = vsyncpa [#allocation6 + $0x1], 1 }
 0x108   :  { %347 = vsyncpa [#allocation4], 1 }
 0x109   :  { %349 = vsyncpa [#allocation4 + $0x1], 1 }

</bundles_post_ra>
